<compile_context>
chip_gen: v7x
topology: tpu7x:2x2x1
jax: 0.10.0
libtpu: 0.0.40
codegen_flags: <defaults>
</compile_context>

<pallas_src>
import functools

import jax
import jax.numpy as jnp
from jax import lax
from jax.experimental import pallas as pl
from jax.experimental.pallas import tpu as pltpu


def _cos_loss_kernel(*refs, normalize_vec, zero_discard, has_mask,
                     bb, c, s_total, block_cols, tiles_per_split, n_tiles):
    if has_mask:
        pred_ref, target_ref, mask_ref, sum_ref, cnt_ref, acc_sum, acc_cnt = refs
    else:
        pred_ref, target_ref, sum_ref, cnt_ref, acc_sum, acc_cnt = refs
        mask_ref = None

    s_idx = pl.program_id(1)          # spatial-split index
    j = pl.program_id(2)              # tile index within the split

    @pl.when(j == 0)
    def _():
        acc_sum[...] = jnp.zeros_like(acc_sum)
        acc_cnt[...] = jnp.zeros_like(acc_cnt)

    # (bb*c, T) tiles: full sublane utilization for the elementwise products.
    p = pred_ref[0].astype(jnp.float32)
    t = target_ref[0].astype(jnp.float32)

    pp = p * p
    tt = t * t
    pt = p * t

    def group_sum(x):
        # (bb*c, T) -> (bb, T): sum each contiguous group of `c` sublanes
        # (one group per packed batch element).
        if bb == 1:
            return jnp.sum(x, axis=0, keepdims=True)
        parts = [jnp.sum(x[g * c:(g + 1) * c, :], axis=0, keepdims=True)
                 for g in range(bb)]
        return jnp.concatenate(parts, axis=0)

    p_sq = group_sum(pp)                      # (bb, T)
    t_sq = group_sum(tt)                      # (bb, T)
    dot = group_sum(pt)                       # (bb, T)

    # Base (non-tail) per-location mask, kept lane/sublane dense at (bb, T).
    m = None
    if has_mask:
        m = mask_ref[0].astype(jnp.float32)   # int8 row mask -> f32
    if zero_discard:
        zd = (t_sq > 0.0).astype(jnp.float32)
        m = zd if m is None else m * zd

    if normalize_vec:
        # algebraically identical to: normalize p,t by (norm + 1e-8), then
        # cos = <p',t'> / max(||p'||*||t'||, 1e-8)
        pn = jnp.sqrt(p_sq)
        tn = jnp.sqrt(t_sq)
        denom = jnp.maximum(pn * tn, 1e-8 * (pn + 1e-8) * (tn + 1e-8))
        cos = dot / denom
    else:
        # dot / max(||p||*||t||, 1e-8) == dot * rsqrt(max(p_sq*t_sq, 1e-16))
        cos = dot * lax.rsqrt(jnp.maximum(p_sq * t_sq, 1e-16))
    loss = 1.0 - cos                          # (bb, T)

    def accumulate(mm, use_where):
        if mm is None:
            acc_sum[...] += loss
            acc_cnt[...] += 1.0
        elif use_where:
            # where-form protects the accumulators from possible Inf/NaN loss
            # in the out-of-range (padded) lanes of the last ragged tile.
            acc_sum[...] += jnp.where(mm > 0.0, loss, 0.0)
            acc_cnt[...] += mm
        else:
            acc_sum[...] += mm * loss
            acc_cnt[...] += mm

    tile_idx = s_idx * tiles_per_split + j    # global spatial tile index
    if s_total % block_cols != 0:
        is_last = tile_idx == (n_tiles - 1)

        @pl.when(jnp.logical_not(is_last))
        def _():
            accumulate(m, use_where=False)    # all lanes are real data

        @pl.when(is_last)
        def _():
            lane = lax.broadcasted_iota(jnp.int32, loss.shape, 1)
            in_range = (lane < (s_total - tile_idx * block_cols)
                        ).astype(jnp.float32)
            mm = in_range if m is None else m * in_range
            accumulate(mm, use_where=True)
    else:
        accumulate(m, use_where=False)

    @pl.when(j == tiles_per_split - 1)
    def _():
        sum_ref[...] = jnp.sum(acc_sum[...], keepdims=True).reshape(1, 1, 1)
        cnt_ref[...] = jnp.sum(acc_cnt[...], keepdims=True).reshape(1, 1, 1)


def cosine_similarity_loss(pred, target, select_mask=None, *,
                           normalize_vec=True, zero_discard=True,
                           reduction='mean', block_cols=None):
    """JAX/Pallas equivalent of CosineSImilarityLoss.forward (NCHW inputs)."""
    B, C, H, W = pred.shape
    S = H * W
    itemsize = jnp.dtype(pred.dtype).itemsize

    # ---- batch -> sublane packing (fill the native sublane pack) ------------
    pack = {1: 32, 2: 16, 4: 8}.get(itemsize, 8)
    bb_max = max(1, pack // C)
    Bb = 1
    for cand in range(min(B, bb_max), 0, -1):
        if B % cand == 0:
            Bb = cand
            break
    G = B // Bb

    # Free, contiguous reshapes: NCHW -> (G, Bb*C, S).  No transpose/pad/cast.
    pred3 = pred.reshape(G, Bb * C, S)
    target3 = target.reshape(G, Bb * C, S)

    has_mask = select_mask is not None
    if has_mask:
        # TODO(synk): the PyTorch all-or-nothing channel-mask asserts need a
        # host sync / checkify; omitted here to keep the wrapper jittable.
        row_mask = jnp.all(select_mask, axis=1).reshape(G, Bb, S).astype(jnp.int8)

    # ---- generation-aware spatial tile sizing -------------------------------
    try:
        vmem_cap = int(pltpu.get_tpu_info().vmem_capacity_bytes)
    except Exception:
        vmem_cap = 64 << 20  # conservative fallback (v7x-sized)
    if block_cols is None:
        # ~4 MiB per input block on 128-MiB-VMEM parts, ~2 MiB on v7x: big
        # enough to amortize the ~0.35us per-grid-step overhead.
        target_tile_bytes = max(1 << 20, min(4 << 20, vmem_cap // 32))
        block_cols = max(
            128, (target_tile_bytes // max(1, Bb * C * itemsize)) // 128 * 128)
    T = S if S <= block_cols else block_cols
    n_tiles = pl.cdiv(S, T)

    # Optional 2-way spatial split so both v7x TensorCores stay busy when the
    # batch-group axis alone cannot be parallelized.  Only when the tile count
    # divides evenly (so no block is ever fully out of bounds).
    n_split = 2 if (G == 1 and n_tiles >= 2 and n_tiles % 2 == 0) else 1
    tps = n_tiles // n_split

    # Raise the scoped-VMEM limit so the bigger double-buffered working set
    # (plus compiler-materialized temporaries) fits on every generation.
    vmem_limit = int(min(max(32 << 20, vmem_cap * 3 // 4), 112 << 20))

    kernel = functools.partial(_cos_loss_kernel,
                               normalize_vec=normalize_vec,
                               zero_discard=zero_discard,
                               has_mask=has_mask,
                               bb=Bb, c=C, s_total=S, block_cols=T,
                               tiles_per_split=tps, n_tiles=n_tiles)

    def in_idx(g, s, j):
        return (g, 0, s * tps + j)

    def out_idx(g, s, j):
        return (g * n_split + s, 0, 0)

    in_specs = [pl.BlockSpec((1, Bb * C, T), in_idx),
                pl.BlockSpec((1, Bb * C, T), in_idx)]
    inputs = [pred3, target3]
    if has_mask:
        in_specs.append(pl.BlockSpec((1, Bb, T), in_idx))
        inputs.append(row_mask)

    loss_sum, count = pl.pallas_call(
        kernel,
        out_shape=(jax.ShapeDtypeStruct((G * n_split, 1, 1), jnp.float32),
                   jax.ShapeDtypeStruct((G * n_split, 1, 1), jnp.float32)),
        grid_spec=pltpu.PrefetchScalarGridSpec(
            num_scalar_prefetch=0,
            grid=(G, n_split, tps),
            in_specs=in_specs,
            out_specs=(pl.BlockSpec((1, 1, 1), out_idx),
                       pl.BlockSpec((1, 1, 1), out_idx)),
            scratch_shapes=[pltpu.VMEM((Bb, T), jnp.float32),
                            pltpu.VMEM((Bb, T), jnp.float32)]),
        compiler_params=pltpu.CompilerParams(
            dimension_semantics=("parallel", "parallel", "arbitrary"),
            vmem_limit_bytes=vmem_limit),
    )(*inputs)

    total = jnp.sum(loss_sum)
    cnt = jnp.sum(count)
    if reduction == 'mean':
        # Matches PyTorch: mean over an empty selection is NaN (0/0).
        return total / cnt
    elif reduction == 'sum':
        return total
    elif reduction == 'none':
        # TODO(synk): 'none' reduction returns a dynamically-sized
        # (masked-gather) vector; no static-shape Pallas equivalent.
        raise NotImplementedError
    else:
        raise NotImplementedError


def _reference(pred, target, select_mask=None, normalize_vec=True, zero_discard=True):
    """Plain-JAX reference mirroring the PyTorch module (reduction='mean')."""
    B, C, H, W = pred.shape
    p = jnp.transpose(pred, (0, 2, 3, 1)).reshape(-1, C).astype(jnp.float32)
    t = jnp.transpose(target, (0, 2, 3, 1)).reshape(-1, C).astype(jnp.float32)
    if select_mask is None:
        mask = jnp.ones((p.shape[0],), dtype=jnp.float32)
    else:
        mask = jnp.all(jnp.transpose(select_mask, (0, 2, 3, 1)),
                       axis=-1).reshape(-1).astype(jnp.float32)
    tn = jnp.linalg.norm(t, axis=1)
    if zero_discard:
        mask = mask * (tn > 0).astype(jnp.float32)
    if normalize_vec:
        p = p / (jnp.linalg.norm(p, axis=1, keepdims=True) + 1e-8)
        t = t / (jnp.linalg.norm(t, axis=1, keepdims=True) + 1e-8)
    cos = jnp.sum(p * t, axis=1) / jnp.maximum(
        jnp.linalg.norm(p, axis=1) * jnp.linalg.norm(t, axis=1), 1e-8)
    loss = (1.0 - cos) * mask
    return jnp.sum(loss) / jnp.sum(mask)


if __name__ == "__main__":
    key = jax.random.PRNGKey(0)
    k1, k2, k3, k4 = jax.random.split(key, 4)

    B, C, H, W = 2, 4, 16, 16
    pred = jax.random.normal(k1, (B, C, H, W), dtype=jnp.float32)
    target = jax.random.normal(k2, (B, C, H, W), dtype=jnp.float32)
    # zero out some target spatial locations so zero_discard is exercised
    zero_locs = jnp.zeros((B, 1, H, W), jnp.float32).at[:, :, :2, :2].set(1.0)
    target = target * (1.0 - zero_locs)

    # 1) default path: no select_mask (single full-width spatial tile)
    loss = cosine_similarity_loss(pred, target)
    jax.block_until_ready(loss)
    ref = _reference(pred, target)
    assert jnp.allclose(loss, ref, atol=1e-5, rtol=1e-5), (loss, ref)

    # 2) explicit all-or-nothing channel select mask (int8 row-mask stream)
    sel = jnp.ones((B, C, H, W), dtype=bool).at[:, :, 8:, :].set(False)
    loss_m = cosine_similarity_loss(pred, target, sel)
    jax.block_until_ready(loss_m)
    ref_m = _reference(pred, target, sel)
    assert jnp.allclose(loss_m, ref_m, atol=1e-5, rtol=1e-5), (loss_m, ref_m)

    # 3) normalize_vec=False (fused rsqrt path)
    loss_n = cosine_similarity_loss(pred, target, normalize_vec=False)
    jax.block_until_ready(loss_n)
    ref_n = _reference(pred, target, normalize_vec=False)
    assert jnp.allclose(loss_n, ref_n, atol=1e-5, rtol=1e-5), (loss_n, ref_n)

    # 4) multi-tile accumulation + ragged last tile + 2-way spatial split
    H2, W2 = 20, 24
    pred2 = jax.random.normal(k3, (B, C, H2, W2), dtype=jnp.float32)
    target2 = jax.random.normal(k4, (B, C, H2, W2), dtype=jnp.float32)
    target2 = target2.at[:, :, :1, :3].set(0.0)
    sel2 = jnp.ones((B, C, H2, W2), dtype=bool).at[:, :, :, 12:].set(False)
    loss_r = cosine_similarity_loss(pred2, target2, sel2, block_cols=128)
    jax.block_until_ready(loss_r)
    ref_r = _reference(pred2, target2, sel2)
    assert jnp.allclose(loss_r, ref_r, atol=1e-5, rtol=1e-5), (loss_r, ref_r)

    print("KERNEL_OK")
</pallas_src>

<mosaic_0001>
module attributes {stable_mosaic.version = 11 : i64} {
  func.func @_cos_loss_kernel(%arg0: i32, %arg1: i32, %arg2: i32, %arg3: memref<1x8x256xf32, #tpu.memory_space<vmem>>, %arg4: memref<1x8x256xf32, #tpu.memory_space<vmem>>, %arg5: memref<1x1x1xf32, #tpu.memory_space<vmem>>, %arg6: memref<1x1x1xf32, #tpu.memory_space<vmem>>, %arg7: memref<2x256xf32, #tpu.memory_space<vmem>>, %arg8: memref<2x256xf32, #tpu.memory_space<vmem>>) attributes {dimension_semantics = [#tpu.dimension_semantics<parallel>, #tpu.dimension_semantics<parallel>, #tpu.dimension_semantics<arbitrary>], iteration_bounds = array<i64: 1, 1, 1>, scalar_prefetch = 0 : i64, scratch_operands = 2 : i64, tpu.core_type = #tpu.core_type<tc>, window_params = [{transform_indices = @transform_0, window_bounds = array<i64: 1, 8, 256>}, {transform_indices = @transform_1, window_bounds = array<i64: 1, 8, 256>}, {transform_indices = @transform_2, window_bounds = array<i64: 1, 1, 1>}, {transform_indices = @transform_3, window_bounds = array<i64: 1, 1, 1>}]} {
    %c0_i32 = arith.constant 0 : i32
    %0 = arith.cmpi eq, %arg2, %c0_i32 : i32
    %1 = arith.extui %0 : i1 to i32
    %c0_i32_0 = arith.constant 0 : i32
    %2 = arith.cmpi ne, %1, %c0_i32_0 : i32
    scf.if %2 {
      %cst_26 = arith.constant 0.000000e+00 : f32
      %59 = vector.broadcast %cst_26 : f32 to vector<2x256xf32>
      %c0_27 = arith.constant 0 : index
      %c0_28 = arith.constant 0 : index
      %60 = vector.load %arg7[%c0_27, %c0_28] : memref<2x256xf32, #tpu.memory_space<vmem>>, vector<2x256xf32>
      tpu.vector_store %arg7[%c0_27, %c0_28], %59 {strides = array<i32>} : memref<2x256xf32, #tpu.memory_space<vmem>>, vector<2x256xf32>,
      %cst_29 = arith.constant 0.000000e+00 : f32
      %61 = vector.broadcast %cst_29 : f32 to vector<2x256xf32>
      %c0_30 = arith.constant 0 : index
      %c0_31 = arith.constant 0 : index
      %62 = vector.load %arg8[%c0_30, %c0_31] : memref<2x256xf32, #tpu.memory_space<vmem>>, vector<2x256xf32>
      tpu.vector_store %arg8[%c0_30, %c0_31], %61 {strides = array<i32>} : memref<2x256xf32, #tpu.memory_space<vmem>>, vector<2x256xf32>,
    } else {
    }
    %c0 = arith.constant 0 : index
    %c0_1 = arith.constant 0 : index
    %c0_2 = arith.constant 0 : index
    %3 = vector.load %arg3[%c0, %c0_1, %c0_2] : memref<1x8x256xf32, #tpu.memory_space<vmem>>, vector<1x8x256xf32>
    %4 = vector.shape_cast %3 : vector<1x8x256xf32> to vector<8x256xf32>
    %c0_3 = arith.constant 0 : index
    %c0_4 = arith.constant 0 : index
    %c0_5 = arith.constant 0 : index
    %5 = vector.load %arg4[%c0_3, %c0_4, %c0_5] : memref<1x8x256xf32, #tpu.memory_space<vmem>>, vector<1x8x256xf32>
    %6 = vector.shape_cast %5 : vector<1x8x256xf32> to vector<8x256xf32>
    %7 = arith.mulf %4, %4 : vector<8x256xf32>
    %8 = arith.mulf %6, %6 : vector<8x256xf32>
    %9 = arith.mulf %4, %6 : vector<8x256xf32>
    %10 = vector.extract_strided_slice %7 {offsets = [0, 0], sizes = [4, 256], strides = [1, 1]} : vector<8x256xf32> to vector<4x256xf32>
    %cst = arith.constant dense<0.000000e+00> : vector<256xf32>
    %11 = vector.multi_reduction <add>, %10, %cst [0] : vector<4x256xf32> to vector<256xf32>
    %12 = vector.shape_cast %11 : vector<256xf32> to vector<1x256xf32>
    %13 = vector.extract_strided_slice %7 {offsets = [4, 0], sizes = [4, 256], strides = [1, 1]} : vector<8x256xf32> to vector<4x256xf32>
    %cst_6 = arith.constant dense<0.000000e+00> : vector<256xf32>
    %14 = vector.multi_reduction <add>, %13, %cst_6 [0] : vector<4x256xf32> to vector<256xf32>
    %15 = vector.shape_cast %14 : vector<256xf32> to vector<1x256xf32>
    %16 = tpu.concatenate %12, %15 in 0 : vector<1x256xf32>, vector<1x256xf32> -> vector<2x256xf32>
    %17 = vector.extract_strided_slice %8 {offsets = [0, 0], sizes = [4, 256], strides = [1, 1]} : vector<8x256xf32> to vector<4x256xf32>
    %cst_7 = arith.constant dense<0.000000e+00> : vector<256xf32>
    %18 = vector.multi_reduction <add>, %17, %cst_7 [0] : vector<4x256xf32> to vector<256xf32>
    %19 = vector.shape_cast %18 : vector<256xf32> to vector<1x256xf32>
    %20 = vector.extract_strided_slice %8 {offsets = [4, 0], sizes = [4, 256], strides = [1, 1]} : vector<8x256xf32> to vector<4x256xf32>
    %cst_8 = arith.constant dense<0.000000e+00> : vector<256xf32>
    %21 = vector.multi_reduction <add>, %20, %cst_8 [0] : vector<4x256xf32> to vector<256xf32>
    %22 = vector.shape_cast %21 : vector<256xf32> to vector<1x256xf32>
    %23 = tpu.concatenate %19, %22 in 0 : vector<1x256xf32>, vector<1x256xf32> -> vector<2x256xf32>
    %24 = vector.extract_strided_slice %9 {offsets = [0, 0], sizes = [4, 256], strides = [1, 1]} : vector<8x256xf32> to vector<4x256xf32>
    %cst_9 = arith.constant dense<0.000000e+00> : vector<256xf32>
    %25 = vector.multi_reduction <add>, %24, %cst_9 [0] : vector<4x256xf32> to vector<256xf32>
    %26 = vector.shape_cast %25 : vector<256xf32> to vector<1x256xf32>
    %27 = vector.extract_strided_slice %9 {offsets = [4, 0], sizes = [4, 256], strides = [1, 1]} : vector<8x256xf32> to vector<4x256xf32>
    %cst_10 = arith.constant dense<0.000000e+00> : vector<256xf32>
    %28 = vector.multi_reduction <add>, %27, %cst_10 [0] : vector<4x256xf32> to vector<256xf32>
    %29 = vector.shape_cast %28 : vector<256xf32> to vector<1x256xf32>
    %30 = tpu.concatenate %26, %29 in 0 : vector<1x256xf32>, vector<1x256xf32> -> vector<2x256xf32>
    %cst_11 = arith.constant 0.000000e+00 : f32
    %31 = vector.broadcast %cst_11 : f32 to vector<2x256xf32>
    %32 = arith.cmpf ogt, %23, %31 : vector<2x256xf32>
    %33 = arith.extui %32 : vector<2x256xi1> to vector<2x256xi32>
    %34 = arith.sitofp %33 : vector<2x256xi32> to vector<2x256xf32>
    %35 = math.sqrt %16 : vector<2x256xf32>
    %36 = math.sqrt %23 : vector<2x256xf32>
    %37 = arith.mulf %35, %36 : vector<2x256xf32>
    %cst_12 = arith.constant 9.99999993E-9 : f32
    %38 = vector.broadcast %cst_12 : f32 to vector<2x256xf32>
    %39 = arith.addf %35, %38 : vector<2x256xf32>
    %cst_13 = arith.constant 9.99999993E-9 : f32
    %40 = vector.broadcast %cst_13 : f32 to vector<2x256xf32>
    %41 = arith.mulf %40, %39 : vector<2x256xf32>
    %cst_14 = arith.constant 9.99999993E-9 : f32
    %42 = vector.broadcast %cst_14 : f32 to vector<2x256xf32>
    %43 = arith.addf %36, %42 : vector<2x256xf32>
    %44 = arith.mulf %41, %43 : vector<2x256xf32>
    %45 = arith.maximumf %37, %44 : vector<2x256xf32>
    %46 = arith.divf %30, %45 : vector<2x256xf32>
    %cst_15 = arith.constant 1.000000e+00 : f32
    %47 = vector.broadcast %cst_15 : f32 to vector<2x256xf32>
    %48 = arith.subf %47, %46 : vector<2x256xf32>
    %c0_16 = arith.constant 0 : index
    %c0_17 = arith.constant 0 : index
    %49 = vector.load %arg7[%c0_16, %c0_17] : memref<2x256xf32, #tpu.memory_space<vmem>>, vector<2x256xf32>
    %50 = arith.mulf %34, %48 : vector<2x256xf32>
    %51 = arith.addf %49, %50 : vector<2x256xf32>
    %c0_18 = arith.constant 0 : index
    %c0_19 = arith.constant 0 : index
    %52 = vector.load %arg7[%c0_18, %c0_19] : memref<2x256xf32, #tpu.memory_space<vmem>>, vector<2x256xf32>
    tpu.vector_store %arg7[%c0_18, %c0_19], %51 {strides = array<i32>} : memref<2x256xf32, #tpu.memory_space<vmem>>, vector<2x256xf32>,
    %c0_20 = arith.constant 0 : index
    %c0_21 = arith.constant 0 : index
    %53 = vector.load %arg8[%c0_20, %c0_21] : memref<2x256xf32, #tpu.memory_space<vmem>>, vector<2x256xf32>
    %54 = arith.addf %53, %34 : vector<2x256xf32>
    %c0_22 = arith.constant 0 : index
    %c0_23 = arith.constant 0 : index
    %55 = vector.load %arg8[%c0_22, %c0_23] : memref<2x256xf32, #tpu.memory_space<vmem>>, vector<2x256xf32>
    tpu.vector_store %arg8[%c0_22, %c0_23], %54 {strides = array<i32>} : memref<2x256xf32, #tpu.memory_space<vmem>>, vector<2x256xf32>,
    %c0_i32_24 = arith.constant 0 : i32
    %56 = arith.cmpi eq, %arg2, %c0_i32_24 : i32
    %57 = arith.extui %56 : i1 to i32
    %c0_i32_25 = arith.constant 0 : i32
    %58 = arith.cmpi ne, %57, %c0_i32_25 : i32
    scf.if %58 {
      %c0_26 = arith.constant 0 : index
      %c0_27 = arith.constant 0 : index
      %59 = vector.load %arg7[%c0_26, %c0_27] : memref<2x256xf32, #tpu.memory_space<vmem>>, vector<2x256xf32>
      %60 = vector.shape_cast %59 : vector<2x256xf32> to vector<1x2x256xf32>
      %cst_28 = arith.constant dense<0.000000e+00> : vector<1xf32>
      %61 = vector.multi_reduction <add>, %60, %cst_28 [1, 2] : vector<1x2x256xf32> to vector<1xf32>
      %62 = vector.shape_cast %61 : vector<1xf32> to vector<1x1x1xf32>
      %63 = vector.extract %62[0, 0, 0] : f32 from vector<1x1x1xf32>
      %64 = vector.broadcast %63 : f32 to vector<1x1xf32>
      %65 = vector.shape_cast %64 : vector<1x1xf32> to vector<1x1x1xf32>
      %c0_29 = arith.constant 0 : index
      %c0_30 = arith.constant 0 : index
      %c0_31 = arith.constant 0 : index
      %66 = vector.load %arg5[%c0_29, %c0_30, %c0_31] : memref<1x1x1xf32, #tpu.memory_space<vmem>>, vector<1x1x1xf32>
      tpu.vector_store %arg5[%c0_29, %c0_30, %c0_31], %65 {strides = array<i32>} : memref<1x1x1xf32, #tpu.memory_space<vmem>>, vector<1x1x1xf32>,
      %c0_32 = arith.constant 0 : index
      %c0_33 = arith.constant 0 : index
      %67 = vector.load %arg8[%c0_32, %c0_33] : memref<2x256xf32, #tpu.memory_space<vmem>>, vector<2x256xf32>
      %68 = vector.shape_cast %67 : vector<2x256xf32> to vector<1x2x256xf32>
      %cst_34 = arith.constant dense<0.000000e+00> : vector<1xf32>
      %69 = vector.multi_reduction <add>, %68, %cst_34 [1, 2] : vector<1x2x256xf32> to vector<1xf32>
      %70 = vector.shape_cast %69 : vector<1xf32> to vector<1x1x1xf32>
      %71 = vector.extract %70[0, 0, 0] : f32 from vector<1x1x1xf32>
      %72 = vector.broadcast %71 : f32 to vector<1x1xf32>
      %73 = vector.shape_cast %72 : vector<1x1xf32> to vector<1x1x1xf32>
      %c0_35 = arith.constant 0 : index
      %c0_36 = arith.constant 0 : index
      %c0_37 = arith.constant 0 : index
      %74 = vector.load %arg6[%c0_35, %c0_36, %c0_37] : memref<1x1x1xf32, #tpu.memory_space<vmem>>, vector<1x1x1xf32>
      tpu.vector_store %arg6[%c0_35, %c0_36, %c0_37], %73 {strides = array<i32>} : memref<1x1x1xf32, #tpu.memory_space<vmem>>, vector<1x1x1xf32>,
    } else {
    }
    return
  }
  func.func @transform_0(%arg0: i32, %arg1: i32, %arg2: i32) -> (i32, i32, i32) {
    %c1_i32 = arith.constant 1 : i32
    %0 = arith.muli %arg1, %c1_i32 : i32
    %1 = arith.addi %0, %arg2 : i32
    %c0_i32 = arith.constant 0 : i32
    %c0_i32_0 = arith.constant 0 : i32
    return %arg0, %c0_i32, %1 : i32, i32, i32
  }
  func.func @transform_1(%arg0: i32, %arg1: i32, %arg2: i32) -> (i32, i32, i32) {
    %c1_i32 = arith.constant 1 : i32
    %0 = arith.muli %arg1, %c1_i32 : i32
    %1 = arith.addi %0, %arg2 : i32
    %c0_i32 = arith.constant 0 : i32
    %c0_i32_0 = arith.constant 0 : i32
    return %arg0, %c0_i32, %1 : i32, i32, i32
  }
  func.func @transform_2(%arg0: i32, %arg1: i32, %arg2: i32) -> (i32, i32, i32) {
    %c1_i32 = arith.constant 1 : i32
    %0 = arith.muli %arg0, %c1_i32 : i32
    %1 = arith.addi %0, %arg1 : i32
    %c0_i32 = arith.constant 0 : i32
    %c0_i32_0 = arith.constant 0 : i32
    %c0_i32_1 = arith.constant 0 : i32
    return %1, %c0_i32, %c0_i32_0 : i32, i32, i32
  }
  func.func @transform_3(%arg0: i32, %arg1: i32, %arg2: i32) -> (i32, i32, i32) {
    %c1_i32 = arith.constant 1 : i32
    %0 = arith.muli %arg0, %c1_i32 : i32
    %1 = arith.addi %0, %arg1 : i32
    %c0_i32 = arith.constant 0 : i32
    %c0_i32_0 = arith.constant 0 : i32
    %c0_i32_1 = arith.constant 0 : i32
    return %1, %c0_i32, %c0_i32_0 : i32, i32, i32
  }
}

</mosaic_0001>

<bundles_post_ra>
// kernel: tpu_custom_call.1
= control target key start
LH: loop header
LB: loop body
LE: loop exit
PB: predicated region body
PF: predicated region fallthrough
CT: control target
= control target key end

     0   :  { %9 = vsyncpa [#allocation5], 0  ;;  %s626_s0 = inlined_call_operand.hbm [shape: f32[1,8,256], index: 0, kind: input, shape index: {}]   ;;  %s627_s1 = inlined_call_operand.hbm [shape: f32[1,8,256], index: 1, kind: input, shape index: {}]   ;;  %s628_s2 = inlined_call_operand.hbm [shape: f32[1,1,1], index: 2, kind: output, shape index: {0}]   ;;  %s629_s3 = inlined_call_operand.hbm [shape: f32[1,1,1], index: 3, kind: output, shape index: {1}]  }
   0x1   :  { %10 = vsyncpa [#allocation8], 0 }
   0x2   :  { %11 = vsyncpa [#allocation6], 0 }
   0x3   :  { %12 = vsyncpa [#allocation11], 0  ;;  %s476_s12 = smov [#allocation4]   ;;  %s477_s14 = smov [#allocation7]  }
   0x4   :  { %s23_s13 = sshll.u32 %s476_s12, 4  ;;  %s37_s15 = sshll.u32 %s477_s14, 4  ;;  %s24_s13 = int_to_ptr.vmem [resolvable:$true] %s23_s13  ;;  %s38_s15 = int_to_ptr.vmem [resolvable:$true] %s37_s15 }
   0x5   :  { %s380_s18 = scalar_lea.hbm %s626_s0, 256 }
   0x6   :  { %p381_p0 = scmp.ne.s32.totalorder %s626_s0, %s380_s18  ;;  %p384_p1 = scmp.lt.u32.totalorder %s380_s18, %s626_s0 }
   0x8   :  { %p386_p2 = pnand %p384_p1, %p381_p0 }
   0xa   :  { %389 = shalt.err (!%p386_p2)
}
   0xb   :  { %s390_s23 = scalar_lea.vmem %s24_s13, 256  ;;  %p395_p4 = scmp.lt.s32.totalorder %s24_s13, %s24_s13 }
   0xc   :  { %p391_p3 = scmp.ne.s32.totalorder %s24_s13, %s390_s23  ;;  %p396_p5 = scmp.lt.s32.totalorder %s390_s23, %s390_s23 }
   0xe   :  { %p397_p6 = por %p396_p5, %p395_p4 }
  0x10   :  { %p398_p7 = pnand %p397_p6, %p391_p3 }
  0x12   :  { %401 = shalt.err (!%p398_p7)
}
  0x13   :  { %26 = dma.hbm_to_vmem [thread:$0]  %s626_s0, 256, %s24_s13, [#allocation5]  }
  0x14   :  { %s402_s28 = scalar_lea.hbm %s627_s1, 256 }
  0x15   :  { %p403_p8 = scmp.ne.s32.totalorder %s627_s1, %s402_s28  ;;  %p406_p9 = scmp.lt.u32.totalorder %s402_s28, %s627_s1 }
  0x17   :  { %p408_p10 = pnand %p406_p9, %p403_p8 }
  0x19   :  { %411 = shalt.err (!%p408_p10)
}
  0x1a   :  { %s412_s6 = scalar_lea.vmem %s38_s15, 256  ;;  %p417_p12 = scmp.lt.s32.totalorder %s38_s15, %s38_s15 }
  0x1b   :  { %p413_p11 = scmp.ne.s32.totalorder %s38_s15, %s412_s6  ;;  %p418_p13 = scmp.lt.s32.totalorder %s412_s6, %s412_s6 }
  0x1d   :  { %p419_p0 = por %p418_p13, %p417_p12 }
  0x1f   :  { %p420_p1 = pnand %p419_p0, %p413_p11 }
  0x21   :  { %423 = shalt.err (!%p420_p1)
}
  0x22   :  { %40 = dma.hbm_to_vmem [thread:$0]  %s627_s1, 256, %s38_s15, [#allocation8]  }
  0x23   :  { %468 = dma.done.wait [#allocation5], 256  }
  0x24   :  { %469 = vsyncadd [#allocation5], 4294967040 }
  0x25   :  { %470 = dma.done.wait [#allocation8], 256  }
  0x26   :  { %471 = vsyncadd [#allocation8], 4294967040  ;;  %v478_v0 = vmov 0.0   ;;  %v528_v1 = vld [vmem:[#allocation4] sm:$0xff]  ;;  %v530_v2 = vld [vmem:[#allocation4 + $0x8] sm:$0xff]  ;;  %vm69_vm0 = vcmask 1043456  }
  0x27   :  { %57 = vst [vmem:[#allocation2] sm:$0xf] %v478_v0  ;;  %58 = vst [vmem:[#allocation3] sm:$0xf] %v478_v0  ;;  %v532_v3 = vld [vmem:[#allocation7] sm:$0xff]  ;;  %v534_v4 = vld [vmem:[#allocation7 + $0x8] sm:$0xff]  ;;  %v63_v5 = vmul.f32 %v528_v1, %v528_v1  ;;  %v64_v6 = vmul.f32 %v530_v2, %v530_v2 }
  0x28   :  { %v65_v7 = vmul.f32 %v532_v3, %v532_v3  ;;  %v66_v8 = vmul.f32 %v534_v4, %v534_v4  ;;  %vm104_vm1 = vcmask 1040384   ;;  %vm276_vm12 = vcmask 1041408   ;;  %s480_s1 = smov [#allocation9]   ;;  %s481_s10 = smov [#allocation10]  }
  0x29   :  { %v70_v9 = vsel %vm69_vm0, %v63_v5, 0.0  ;;  %v77_v10 = vsel %vm69_vm0, %v64_v6, 0.0  ;;  %v86_v11 = vrot.slane %v63_v5, 4  ;;  %v87_v12 = vrot.slane %v64_v6, 4  ;;  %s327_s8 = sshll.u32 %s480_s1, 4  ;;  %s340_s11 = sshll.u32 %s481_s10, 4  ;;  %s328_s8 = int_to_ptr.vmem [resolvable:$true] %s327_s8  ;;  %s341_s11 = int_to_ptr.vmem [resolvable:$true] %s340_s11 }
  0x2a   :  { %v71_v13 = vrot.slane %v70_v9, 4  ;;  %v78_v14 = vrot.slane %v77_v10, 4  ;;  %v107_v15 = vsel %vm69_vm0, %v65_v7, 0.0  ;;  %v114_v16 = vsel %vm69_vm0, %v66_v8, 0.0  ;;  %s424_s12 = scalar_lea.vmem %s328_s8, 16  ;;  %s428_s13 = scalar_lea.vmem %s328_s8, 32 }
  0x2b   :  { %v90_v17 = vsel %vm69_vm0, %v86_v11, 0.0  ;;  %v97_v18 = vsel %vm69_vm0, %v87_v12, 0.0  ;;  %v108_v19 = vrot.slane %v107_v15, 4  ;;  %v115_v20 = vrot.slane %v114_v16, 4  ;;  %p425_p2 = scmp.ne.s32.totalorder %s328_s8, %s424_s12  ;;  %p429_p3 = scmp.lt.s32.totalorder %s328_s8, %s328_s8 }
  0x2c   :  { %v72_v21 = vadd.f32 %v71_v13, %v70_v9  ;;  %v79_v22 = vadd.f32 %v78_v14, %v77_v10  ;;  %v91_v23 = vrot.slane %v90_v17, 4  ;;  %v98_v24 = vrot.slane %v97_v18, 4  ;;  %p430_p4 = scmp.lt.s32.totalorder %s428_s13, %s424_s12 }
  0x2d   :  { %v109_v25 = vadd.f32 %v108_v19, %v107_v15  ;;  %v116_v26 = vadd.f32 %v115_v20, %v114_v16  ;;  %v123_v27 = vrot.slane %v65_v7, 4  ;;  %v124_v28 = vrot.slane %v66_v8, 4 }
  0x2e   :  { %v73_v29 = vrot.slane %v72_v21, 2  ;;  %v80_v30 = vrot.slane %v79_v22, 2  ;;  %v92_v31 = vadd.f32 %v91_v23, %v90_v17  ;;  %v99_v32 = vadd.f32 %v98_v24, %v97_v18  ;;  %p431_p5 = por %p430_p4, %p429_p3 }
  0x2f   :  { %v110_v33 = vrot.slane %v109_v25, 2  ;;  %v127_v34 = vsel %vm69_vm0, %v123_v27, 0.0  ;;  %v134_v35 = vsel %vm69_vm0, %v124_v28, 0.0  ;;  %v117_v39 = vrot.slane %v116_v26, 2 }
  0x30   :  { %v74_v36 = vadd.f32 %v73_v29, %v72_v21  ;;  %v93_v37 = vrot.slane %v92_v31, 2  ;;  %v100_v38 = vrot.slane %v99_v32, 2  ;;  %v81_v40 = vadd.f32 %v80_v30, %v79_v22  ;;  %p432_p6 = pnand %p431_p5, %p425_p2 }
  0x31   :  { %v128_v41 = vrot.slane %v127_v34, 4  ;;  %v135_v42 = vrot.slane %v134_v35, 4  ;;  %v111_v46 = vadd.f32 %v110_v33, %v109_v25  ;;  %v118_v51 = vadd.f32 %v117_v39, %v116_v26 }
  0x32   :  { %v75_v43 = vrot.slane %v74_v36, 1  ;;  %v94_v44 = vadd.f32 %v93_v37, %v92_v31  ;;  %v101_v45 = vadd.f32 %v100_v38, %v99_v32  ;;  %v82_v52 = vrot.slane %v81_v40, 1  ;;  %v247_v32 = vld [vmem:[#allocation3] sm:$0xf] }
  0x33   :  { %v129_v47 = vadd.f32 %v128_v41, %v127_v34  ;;  %v136_v48 = vadd.f32 %v135_v42, %v134_v35  ;;  %v112_v57 = vrot.slane %v111_v46, 1  ;;  %v119_v61 = vrot.slane %v118_v51, 1 }
  0x34   :  { %v76_v49 = vadd.f32 %v75_v43, %v74_v36  ;;  %v95_v50 = vrot.slane %v94_v44, 1  ;;  %v102_v53 = vrot.slane %v101_v45, 1  ;;  %v83_v62 = vadd.f32 %v82_v52, %v81_v40 }
  0x35   :  { %v130_v54 = vrot.slane %v129_v47, 2  ;;  %v137_v55 = vrot.slane %v136_v48, 2  ;;  %v479_v7 = vmov 1983009808   ;;  %v240_v9 = vlaneseq }
  0x36   :  { %v96_v56 = vadd.f32 %v95_v50, %v94_v44  ;;  %v103_v63 = vadd.f32 %v102_v53, %v101_v45  ;;  %v238_v8 = vunpack.c.l.s4 %v479_v7  ;;  %v67_v10 = vmul.f32 %v532_v3, %v528_v1 }
  0x37   :  { %v131_v58 = vadd.f32 %v130_v54, %v129_v47  ;;  %v138_v59 = vadd.f32 %v137_v55, %v136_v48  ;;  %v113_v11 = vadd.f32 %v112_v57, %v111_v46  ;;  %v120_v13 = vadd.f32 %v119_v61, %v118_v51 }
  0x38   :  { %v105_v60 = vsel %vm104_vm1, %v76_v49, %v96_v56  ;;  %v68_v15 = vmul.f32 %v534_v4, %v530_v2  ;;  %v106_v16 = vsel %vm104_vm1, %v83_v62, %v103_v63  ;;  %v239_v17 = vunpack.c.0.s8 %v238_v8 }
  0x39   :  { %v132_v5 = vrot.slane %v131_v58, 1  ;;  %v139_v6 = vrot.slane %v138_v59, 1  ;;  %368 = vrsqrt.f32 %v105_v60  ;;  %v241_v18 = vshrl.u32 %v240_v9, 7 }
  0x3a   :  { %v159_v20 = vrot.slane %v67_v10, 4  ;;  %370 = vrsqrt.f32 %v106_v16  ;;  %v160_v1 = vrot.slane %v68_v15, 4  ;;  %v143_v3 = vsel %vm69_vm0, %v67_v10, 0.0 }
  0x3b   :  { %v133_v12 = vadd.f32 %v132_v5, %v131_v58  ;;  %v140_v14 = vadd.f32 %v139_v6, %v138_v59  ;;  %v567_v2 = vsub.s32 %v239_v17, %v241_v18  ;;  %v150_v4 = vsel %vm69_vm0, %v68_v15, 0.0 }
  0x3c   :  { %v163_v22 = vsel %vm69_vm0, %v159_v20, 0.0  ;;  %vm187_vm4 = vcmp.eq.f32.partialorder %v105_v60, inf  ;;  %v190_v26 = vand.u32 2147483648, %v105_v60  ;;  %v170_v27 = vsel %vm69_vm0, %v160_v1, 0.0 }
  0x3d   :  { %v559_v19 = vsel %vm104_vm1, %v113_v11, %v133_v12  ;;  %v562_v21 = vsel %vm104_vm1, %v120_v13, %v140_v14  ;;  %vm189_vm5 = vcmp.eq.f32.partialorder %v105_v60, 0.0  ;;  %v144_v30 = vrot.slane %v143_v3, 4 }
  0x3e   :  { %vm179_vm2 = vcmp.gt.f32.partialorder %v559_v19, 0.0  ;;  %vm180_vm3 = vcmp.gt.f32.partialorder %v562_v21, 0.0  ;;  %372 = vrsqrt.f32 %v559_v19  ;;  %v151_v31 = vrot.slane %v150_v4, 4 }
  0x3f   :  { %374 = vrsqrt.f32 %v562_v21  ;;  %v574_v24 = vsel %vm179_vm2, 1.0, %v478_v0  ;;  %v577_v25 = vsel %vm180_vm3, 1.0, %v478_v0  ;;  %v164_v33 = vrot.slane %v163_v22, 4 }
  0x40   :  { %v250_v29 = vcombine.low %v574_v24, %v577_v25  ;;  %v171_v36 = vrot.slane %v170_v27, 4  ;;  %v145_v39 = vadd.f32 %v144_v30, %v143_v3  ;;  %v152_v40 = vadd.f32 %v151_v31, %v150_v4 }
  0x41   :  { %vm194_vm6 = vcmp.eq.f32.partialorder %v106_v16, inf  ;;  %v197_v41 = vand.u32 2147483648, %v106_v16  ;;  %v165_v42 = vadd.f32 %v164_v33, %v163_v22  ;;  %vm196_vm7 = vcmp.eq.f32.partialorder %v106_v16, 0.0 }
  0x42   :  { %v257_v35 = vrot.slane %v250_v29, %v567_v2  ;;  %v172_v46 = vadd.f32 %v171_v36, %v170_v27  ;;  %vm201_vm8 = vcmp.eq.f32.partialorder %v559_v19, inf  ;;  %vm203_vm9 = vcmp.eq.f32.partialorder %v559_v19, 0.0  ;;  %v231_v36 = vld [vmem:[#allocation2] sm:$0xf] }
  0x43   :  { %v369_v23 = vpop.eup %368  ;;  %v204_v47 = vand.u32 2147483648, %v559_v19  ;;  %vm208_vm10 = vcmp.eq.f32.partialorder %v562_v21, inf  ;;  %v211_v51 = vand.u32 2147483648, %v562_v21  ;;  %v146_v52 = vrot.slane %v145_v39, 2 }
  0x44   :  { %v186_v28 = vmul.f32 %v369_v23, %v105_v60  ;;  %v259_v0 = vadd.f32 %v257_v35, %v247_v32  ;;  %v371_v38 = vpop.eup %370  ;;  %vm210_vm11 = vcmp.eq.f32.partialorder %v562_v21, 0.0  ;;  %v166_v55 = vrot.slane %v165_v42, 2 }
  0x45   :  { %v193_v43 = vmul.f32 %v371_v38, %v106_v16  ;;  %v153_v59 = vrot.slane %v152_v40, 2  ;;  %v147_v10 = vadd.f32 %v146_v52, %v145_v39  ;;  %vm290_vm13 = vcmask 0  }
  0x46   :  { %v188_v34 = vsel %vm187_vm4, %v105_v60, %v186_v28  ;;  %260 = vst [vmem:[#allocation3] sm:$0xf] %v259_v0  ;;  %v173_v60 = vrot.slane %v172_v46, 2  ;;  %v167_v11 = vadd.f32 %v166_v55, %v165_v42 }
  0x47   :  { %v191_v37 = vsel %vm189_vm5, %v190_v26, %v188_v34  ;;  %v195_v49 = vsel %vm194_vm6, %v106_v16, %v193_v43  ;;  %v154_v13 = vadd.f32 %v153_v59, %v152_v40  ;;  %v148_v18 = vrot.slane %v147_v10, 1 }
  0x48   :  { %v215_v44 = vadd.f32 1e-08, %v191_v37  ;;  %v373_v45 = vpop.eup %372  ;;  %v198_v53 = vsel %vm196_vm7, %v197_v41, %v195_v49  ;;  %v174_v14 = vadd.f32 %v173_v60, %v172_v46  ;;  %v168_v20 = vrot.slane %v167_v11, 1 }
  0x49   :  { %v375_v48 = vpop.eup %374  ;;  %v200_v50 = vmul.f32 %v373_v45, %v559_v19  ;;  %v216_v57 = vadd.f32 1e-08, %v198_v53 }
  0x4a   :  { %v207_v54 = vmul.f32 %v375_v48, %v562_v21  ;;  %v217_v58 = vmul.f32 1e-08, %v215_v44  ;;  %v175_v1 = vrot.slane %v174_v14, 1  ;;  %v169_v3 = vadd.f32 %v168_v20, %v167_v11 }
  0x4b   :  { %v202_v56 = vsel %vm201_vm8, %v559_v19, %v200_v50  ;;  %v218_v6 = vmul.f32 1e-08, %v216_v57  ;;  %v155_v19 = vrot.slane %v154_v13, 1 }
  0x4c   :  { %v205_v61 = vsel %vm203_vm9, %v204_v47, %v202_v56  ;;  %v209_v62 = vsel %vm208_vm10, %v562_v21, %v207_v54  ;;  %v149_v21 = vadd.f32 %v148_v18, %v147_v10  ;;  %v176_v22 = vadd.f32 %v175_v1, %v174_v14 }
  0x4d   :  { %v212_v63 = vsel %vm210_vm11, %v211_v51, %v209_v62  ;;  %v213_v5 = vmul.f32 %v205_v61, %v191_v37  ;;  %v219_v7 = vadd.f32 1e-08, %v205_v61  ;;  %v156_v4 = vadd.f32 %v155_v19, %v154_v13  ;;  %v357_v38 = vld.sshfl [vmem:[#allocation3] sm:$0x33 pattern:$0x76325410] }
  0x4e   :  { %v214_v8 = vmul.f32 %v212_v63, %v198_v53  ;;  %v220_v9 = vadd.f32 1e-08, %v212_v63  ;;  %v177_v23 = vsel %vm104_vm1, %v149_v21, %v169_v3  ;;  %v301_v39 = vcombine.high %v357_v38, %v357_v38 }
  0x4f   :  { %v221_v12 = vmul.f32 %v219_v7, %v217_v58  ;;  %v178_v26 = vsel %vm104_vm1, %v156_v4, %v176_v22  ;;  %v304_v44 = vsel %vm276_vm12, %v357_v38, 0.0 }
  0x50   :  { %v222_v15 = vmul.f32 %v220_v9, %v218_v6  ;;  %v305_v45 = vsel %vm276_vm12, %v301_v39, 0.0 }
  0x51   :  { %v223_v16 = vmax.f32 %v213_v5, %v221_v12 }
  0x52   :  { %v224_v17 = vmax.f32 %v214_v8, %v222_v15 }
  0x53   :  { %376 = vrcp.f32 %v223_v16 }
  0x54   :  { %378 = vrcp.f32 %v224_v17 }
  0x5d   :  { %v377_v27 = vpop.eup %376 }
  0x5e   :  { %v379_v28 = vpop.eup %378  ;;  %v226_v29 = vmul.f32 %v377_v27, %v177_v23 }
  0x5f   :  { %v228_v30 = vmul.f32 %v379_v28, %v178_v26 }
  0x60   :  { %v229_v31 = vsub.f32 1.0, %v226_v29 }
  0x61   :  { %v230_v32 = vsub.f32 1.0, %v228_v30 }
  0x62   :  { %v232_v33 = vmul.f32 %v574_v24, %v229_v31  ;;  %v306_v24 = vadd.f32 %v305_v45, %v304_v44 }
  0x63   :  { %v233_v34 = vmul.f32 %v577_v25, %v230_v32 }
  0x65   :  { %v236_v35 = vcombine.low %v232_v33, %v233_v34 }
  0x67   :  { %v243_v37 = vrot.slane %v236_v35, %v567_v2 }
  0x69   :  { %v245_v0 = vadd.f32 %v243_v37, %v231_v36 }
  0x6b   :  { %246 = vst [vmem:[#allocation2] sm:$0xf] %v245_v0 }
  0x72   :  { %v356_v40 = vld.sshfl [vmem:[#allocation2] sm:$0x33 pattern:$0x76325410] }
  0x73   :  { %v273_v41 = vcombine.high %v356_v40, %v356_v40  ;;  %v277_v42 = vsel %vm276_vm12, %v356_v40, 0.0 }
  0x75   :  { %v278_v43 = vsel %vm276_vm12, %v273_v41, 0.0 }
  0x76   :  { %v279_v46 = vadd.f32 %v278_v43, %v277_v42 }
  0x78   :  { %280 = vadd.xlane.f32.xlu0 %v279_v46 }
  0x7c   :  { %307 = vadd.xlane.f32.xlu0 %v306_v24 }
 0x105   :  { %v281_v25 = vpop.xlane.xlu0 %280 }
 0x106   :  { %v282_v47 = vrot.slane %v281_v25, 4 }
 0x108   :  { %v283_v48 = vadd.f32 %v282_v47, %v281_v25 }
 0x109   :  { %v308_v49 = vpop.xlane.xlu0 %307 }
 0x10a   :  { %v284_v2 = vrot.slane %v283_v48, 2  ;;  %v309_v50 = vrot.slane %v308_v49, 4 }
 0x10c   :  { %v310_v51 = vadd.f32 %v309_v50, %v308_v49  ;;  %v285_v52 = vadd.f32 %v284_v2, %v283_v48 }
 0x10e   :  { %v311_v53 = vrot.slane %v310_v51, 2  ;;  %v286_v54 = vrot.slane %v285_v52, 1 }
 0x110   :  { %v312_v55 = vadd.f32 %v311_v53, %v310_v51  ;;  %v287_v56 = vadd.f32 %v286_v54, %v285_v52 }
 0x112   :  { %358 = vpush %v287_v56  ;;  %v313_v57 = vrot.slane %v312_v55, 1 }
 0x114   :  { %v314_v58 = vadd.f32 %v313_v57, %v312_v55 }
 0x116   :  { %360 = vpush %v314_v58 }
 0x143   :  { %s359_s9 = spop %358 }
 0x144   :  { %v289_v59 = vstv %s359_s9 }
 0x145   :  { %291 = vst.msk [vmem:[#allocation9] sm:$0x1] %vm290_vm13, %v289_v59 }
 0x146   :  { %435 = shalt.err (!%p432_p6)
}
 0x147   :  { %s436_s16 = scalar_lea.hbm %s628_s2, 16 }
 0x148   :  { %p437_p7 = scmp.ne.s32.totalorder %s628_s2, %s436_s16  ;;  %p440_p8 = scmp.lt.u32.totalorder %s436_s16, %s628_s2 }
 0x14a   :  { %p442_p9 = pnand %p440_p8, %p437_p7 }
 0x14c   :  { %445 = shalt.err (!%p442_p9)
}
 0x14d   :  { %330 = dma.vmem_to_hbm [thread:$0]  %s328_s8, 16, %s628_s2, [#allocation6]  }
 0x14e   :  { %s361_s23 = spop %360  ;;  %s446_s24 = scalar_lea.vmem %s341_s11, 16 }
 0x14f   :  { %v316_v60 = vstv %s361_s23  ;;  %p447_p10 = scmp.ne.s32.totalorder %s341_s11, %s446_s24  ;;  %s450_s25 = scalar_lea.vmem %s341_s11, 32 }
 0x150   :  { %317 = vst.msk [vmem:[#allocation10] sm:$0x1] %vm290_vm13, %v316_v60  ;;  %p451_p11 = scmp.lt.s32.totalorder %s341_s11, %s341_s11  ;;  %p452_p12 = scmp.lt.s32.totalorder %s450_s25, %s446_s24 }
 0x152   :  { %p453_p13 = por %p452_p12, %p451_p11 }
 0x154   :  { %p454_p0 = pnand %p453_p13, %p447_p10 }
 0x156   :  { %457 = shalt.err (!%p454_p0)
}
 0x157   :  { %s458_s28 = scalar_lea.hbm %s629_s3, 16 }
 0x158   :  { %p459_p1 = scmp.ne.s32.totalorder %s629_s3, %s458_s28  ;;  %p462_p2 = scmp.lt.u32.totalorder %s458_s28, %s629_s3 }
 0x15a   :  { %p464_p3 = pnand %p462_p2, %p459_p1 }
 0x15c   :  { %467 = shalt.err (!%p464_p3)
}
 0x15d   :  { %343 = dma.vmem_to_hbm [thread:$0]  %s341_s11, 16, %s629_s3, [#allocation11]  }
 0x15e   :  { %472 = dma.done.wait [#allocation6], 16  }
 0x15f   :  { %473 = vsyncadd [#allocation6], 4294967280 }
 0x160   :  { %474 = dma.done.wait [#allocation11], 16  }
 0x161   :  { %475 = vsyncadd [#allocation11], 4294967280 }
 0x162   :  { %350 = vsyncpa [#allocation5], 1 }
 0x163   :  { %351 = vsyncpa [#allocation8], 1 }
 0x164   :  { %352 = vsyncpa [#allocation6], 1 }
 0x165   :  { %353 = vsyncpa [#allocation11], 1 }

</bundles_post_ra>
